<compile_context>
chip_gen: v7x
topology: tpu7x:2x2x1
jax: 0.10.0
libtpu: 0.0.40
codegen_flags: <defaults>
</compile_context>

<pallas_src>
import jax
import jax.numpy as jnp
from jax.experimental import pallas as pl
from jax.experimental.pallas import tpu as pltpu

_LANES = 128
_SUBLANES = 8
_TARGET_BLOCK_ROWS = 1024   # 1024 x 128 f32 = 512 KiB per input block
_NCORES = 2                 # leading "parallel" grid axis (v7x: 2 TensorCores)


def _round_up(a, b):
    return (a + b - 1) // b * b


def _weighted_sq_kernel(x_ref, y_ref, s_ref, o_ref):
    """Accumulate scale * (x - y)^2 into a per-core resident output block."""
    @pl.when(pl.program_id(1) == 0)
    def _():
        o_ref[...] = jnp.zeros_like(o_ref)

    d = x_ref[...].astype(jnp.float32) - y_ref[...].astype(jnp.float32)
    # (1, BR, 128) * (1, BR, 1) -> pure VPU work; no per-step XLU reduction.
    o_ref[...] += d * d * s_ref[...]


def _fused_weighted_mse(xs, ys, weights):
    """sum_i w_i * mean((x_i - y_i)^2), computed with a single pallas_call."""
    flat_x, flat_y, row_scales = [], [], []
    for x, y, w in zip(xs, ys, weights):
        assert x.shape == y.shape
        n = x.size
        pad = _round_up(n, _LANES) - n
        flat_x.append(jnp.pad(x.reshape(-1), (0, pad)))
        flat_y.append(jnp.pad(y.reshape(-1), (0, pad)))
        rows_i = (n + pad) // _LANES
        # Per-row scale folds both the level weight and the 1/N of the mean;
        # identical zero padding of x and y contributes exactly 0 to the sum.
        row_scales.append(jnp.full((rows_i,), float(w) / float(n),
                                   dtype=jnp.float32))

    xcat = jnp.concatenate(flat_x)
    ycat = jnp.concatenate(flat_y)
    scat = jnp.concatenate(row_scales)
    rows = scat.shape[0]

    # Split rows across _NCORES equally sized partitions of whole blocks.
    rows_per_core = -(-rows // _NCORES)  # cdiv
    block_rows = min(_TARGET_BLOCK_ROWS, _round_up(rows_per_core, _SUBLANES))
    rows_per_core = _round_up(rows_per_core, block_rows)
    total_rows = rows_per_core * _NCORES

    pad_rows = total_rows - rows
    xcat = jnp.pad(xcat, (0, pad_rows * _LANES))
    ycat = jnp.pad(ycat, (0, pad_rows * _LANES))
    scat = jnp.pad(scat, (0, pad_rows))          # scale 0 on padding rows

    x3 = xcat.reshape(_NCORES, rows_per_core, _LANES)
    y3 = ycat.reshape(_NCORES, rows_per_core, _LANES)
    s3 = scat.reshape(_NCORES, rows_per_core, 1)

    grid = (_NCORES, rows_per_core // block_rows)

    partials = pl.pallas_call(
        _weighted_sq_kernel,
        out_shape=jax.ShapeDtypeStruct((_NCORES, block_rows, _LANES),
                                       jnp.float32),
        grid_spec=pltpu.PrefetchScalarGridSpec(
            num_scalar_prefetch=0,
            grid=grid,
            in_specs=[
                pl.BlockSpec((1, block_rows, _LANES), lambda c, i: (c, i, 0)),
                pl.BlockSpec((1, block_rows, _LANES), lambda c, i: (c, i, 0)),
                pl.BlockSpec((1, block_rows, 1), lambda c, i: (c, i, 0)),
            ],
            # Output block constant across the (last) reduction axis -> it is
            # the VMEM-resident accumulator; one block per parallel core slice.
            out_specs=pl.BlockSpec((1, block_rows, _LANES),
                                   lambda c, i: (c, 0, 0)),
        ),
        compiler_params=pltpu.CompilerParams(
            dimension_semantics=("parallel", "arbitrary")),
    )(x3, y3, s3)

    # Tiny final reduction of the per-core partial blocks in plain XLA.
    return jnp.sum(partials)


def mse_loss_pallas(x, y):
    """MSE (reduction='mean') for a single output/target pair."""
    return _fused_weighted_mse([x], [y], [1.0])


class MultipleOutputLoss2:
    """JAX/Pallas port of the PyTorch MultipleOutputLoss2 wrapper."""

    def __init__(self, loss, weight_factors=None):
        self.weight_factors = weight_factors
        self.loss = loss

    def __call__(self, x, y):
        assert isinstance(x, (tuple, list)), 'x must be either tuple or list'
        assert isinstance(y, (tuple, list)), 'y must be either tuple or list'
        if self.weight_factors is None:
            weights = [1] * len(x)
        else:
            weights = self.weight_factors

        if self.loss is mse_loss_pallas:
            # Fused fast path: one Pallas launch over all levels.  Match the
            # reference exactly: level 0 is always included, later levels are
            # skipped when their weight is 0.
            keep = [0] + [i for i in range(1, len(x)) if weights[i] != 0]
            return _fused_weighted_mse([x[i] for i in keep],
                                       [y[i] for i in keep],
                                       [weights[i] for i in keep])

        # Generic path (arbitrary inner loss): original per-level semantics.
        l = weights[0] * self.loss(x[0], y[0])
        for i in range(1, len(x)):
            if weights[i] != 0:
                l += weights[i] * self.loss(x[i], y[i])
        return l


if __name__ == "__main__":
    key = jax.random.PRNGKey(0)

    # Deep-supervision style multi-scale outputs / targets (NCHW), three levels.
    shapes = [(2, 4, 16, 16), (2, 4, 8, 8), (2, 4, 4, 4)]
    weight_factors = [1.0, 0.5, 0.25]

    xs, ys = [], []
    for s in shapes:
        key, kx, ky = jax.random.split(key, 3)
        xs.append(jax.random.normal(kx, s, dtype=jnp.float32))
        ys.append(jax.random.normal(ky, s, dtype=jnp.float32))

    loss_module = MultipleOutputLoss2(mse_loss_pallas, weight_factors)
    total = jax.block_until_ready(loss_module(xs, ys))

    # Pure-JAX reference of the same semantics (weighted sum of per-level MSE).
    ref = sum(
        w * jnp.mean((x - y) ** 2)
        for w, x, y in zip(weight_factors, xs, ys)
        if w != 0
    )
    assert jnp.allclose(total, ref, rtol=1e-5, atol=1e-6), (total, ref)

    # Single-pair inner loss also goes through the same fused kernel path.
    single = jax.block_until_ready(mse_loss_pallas(xs[0], ys[0]))
    single_ref = jnp.mean((xs[0] - ys[0]) ** 2)
    assert jnp.allclose(single, single_ref, rtol=1e-5, atol=1e-6), (single, single_ref)

    print("KERNEL_OK")
</pallas_src>

<mosaic_0001>
module attributes {stable_mosaic.version = 11 : i64} {
  func.func @_weighted_sq_kernel(%arg0: i32, %arg1: i32, %arg2: memref<1x16x128xf32, #tpu.memory_space<vmem>>, %arg3: memref<1x16x128xf32, #tpu.memory_space<vmem>>, %arg4: memref<1x16x1xf32, #tpu.memory_space<vmem>>, %arg5: memref<1x16x128xf32, #tpu.memory_space<vmem>>) attributes {dimension_semantics = [#tpu.dimension_semantics<parallel>, #tpu.dimension_semantics<arbitrary>], iteration_bounds = array<i64: 2, 1>, scalar_prefetch = 0 : i64, scratch_operands = 0 : i64, tpu.core_type = #tpu.core_type<tc>, window_params = [{transform_indices = @transform_0, window_bounds = array<i64: 1, 16, 128>}, {transform_indices = @transform_1, window_bounds = array<i64: 1, 16, 128>}, {transform_indices = @transform_2, window_bounds = array<i64: 1, 16, 1>}, {transform_indices = @transform_3, window_bounds = array<i64: 1, 16, 128>}]} {
    %c0_i32 = arith.constant 0 : i32
    %0 = arith.cmpi eq, %arg1, %c0_i32 : i32
    %1 = arith.extui %0 : i1 to i32
    %c0_i32_0 = arith.constant 0 : i32
    %2 = arith.cmpi ne, %1, %c0_i32_0 : i32
    scf.if %2 {
      %cst = arith.constant 0.000000e+00 : f32
      %13 = vector.broadcast %cst : f32 to vector<1x16x128xf32>
      %c0_15 = arith.constant 0 : index
      %c0_16 = arith.constant 0 : index
      %c0_17 = arith.constant 0 : index
      %14 = vector.load %arg5[%c0_15, %c0_16, %c0_17] : memref<1x16x128xf32, #tpu.memory_space<vmem>>, vector<1x16x128xf32>
      tpu.vector_store %arg5[%c0_15, %c0_16, %c0_17], %13 {strides = array<i32>} : memref<1x16x128xf32, #tpu.memory_space<vmem>>, vector<1x16x128xf32>,
    } else {
    }
    %c0 = arith.constant 0 : index
    %c0_1 = arith.constant 0 : index
    %c0_2 = arith.constant 0 : index
    %3 = vector.load %arg2[%c0, %c0_1, %c0_2] : memref<1x16x128xf32, #tpu.memory_space<vmem>>, vector<1x16x128xf32>
    %c0_3 = arith.constant 0 : index
    %c0_4 = arith.constant 0 : index
    %c0_5 = arith.constant 0 : index
    %4 = vector.load %arg3[%c0_3, %c0_4, %c0_5] : memref<1x16x128xf32, #tpu.memory_space<vmem>>, vector<1x16x128xf32>
    %5 = arith.subf %3, %4 : vector<1x16x128xf32>
    %c0_6 = arith.constant 0 : index
    %c0_7 = arith.constant 0 : index
    %c0_8 = arith.constant 0 : index
    %6 = vector.load %arg5[%c0_6, %c0_7, %c0_8] : memref<1x16x128xf32, #tpu.memory_space<vmem>>, vector<1x16x128xf32>
    %7 = arith.mulf %5, %5 : vector<1x16x128xf32>
    %c0_9 = arith.constant 0 : index
    %c0_10 = arith.constant 0 : index
    %c0_11 = arith.constant 0 : index
    %8 = vector.load %arg4[%c0_9, %c0_10, %c0_11] : memref<1x16x1xf32, #tpu.memory_space<vmem>>, vector<1x16x1xf32>
    %9 = vector.broadcast %8 : vector<1x16x1xf32> to vector<1x16x128xf32>
    %10 = arith.mulf %7, %9 : vector<1x16x128xf32>
    %11 = arith.addf %6, %10 : vector<1x16x128xf32>
    %c0_12 = arith.constant 0 : index
    %c0_13 = arith.constant 0 : index
    %c0_14 = arith.constant 0 : index
    %12 = vector.load %arg5[%c0_12, %c0_13, %c0_14] : memref<1x16x128xf32, #tpu.memory_space<vmem>>, vector<1x16x128xf32>
    tpu.vector_store %arg5[%c0_12, %c0_13, %c0_14], %11 {strides = array<i32>} : memref<1x16x128xf32, #tpu.memory_space<vmem>>, vector<1x16x128xf32>,
    return
  }
  func.func @transform_0(%arg0: i32, %arg1: i32) -> (i32, i32, i32) {
    %c0_i32 = arith.constant 0 : i32
    %c0_i32_0 = arith.constant 0 : i32
    return %arg0, %arg1, %c0_i32 : i32, i32, i32
  }
  func.func @transform_1(%arg0: i32, %arg1: i32) -> (i32, i32, i32) {
    %c0_i32 = arith.constant 0 : i32
    %c0_i32_0 = arith.constant 0 : i32
    return %arg0, %arg1, %c0_i32 : i32, i32, i32
  }
  func.func @transform_2(%arg0: i32, %arg1: i32) -> (i32, i32, i32) {
    %c0_i32 = arith.constant 0 : i32
    %c0_i32_0 = arith.constant 0 : i32
    return %arg0, %arg1, %c0_i32 : i32, i32, i32
  }
  func.func @transform_3(%arg0: i32, %arg1: i32) -> (i32, i32, i32) {
    %c0_i32 = arith.constant 0 : i32
    %c0_i32_0 = arith.constant 0 : i32
    %c0_i32_1 = arith.constant 0 : i32
    return %arg0, %c0_i32, %c0_i32_0 : i32, i32, i32
  }
}

</mosaic_0001>

<bundles_post_ra>
// kernel: tpu_custom_call.1
= control target key start
LH: loop header
LB: loop body
LE: loop exit
PB: predicated region body
PF: predicated region fallthrough
CT: control target
= control target key end

     0   :  { %8 = vsyncpa [#allocation3], 0  ;;  %s862_s0 = inlined_call_operand.vmem [shape: f32[2,16,128], index: 0, kind: input, shape index: {}]   ;;  %s863_s1 = inlined_call_operand.hbm [shape: f32[2,16,128], index: 1, kind: input, shape index: {}]   ;;  %s864_s2 = inlined_call_operand.vmem [shape: f32[2,16,1], index: 2, kind: input, shape index: {}]   ;;  %s865_s3 = inlined_call_operand.hbm [shape: f32[2,16,128], index: 3, kind: output, shape index: {}]  }
   0x1   :  { %10 = vsyncpa [#allocation3 + $0x1], 0 }
   0x2   :  { %11 = vsyncpa [#allocation4], 0 }
   0x3   :  { %13 = vsyncpa [#allocation4 + $0x1], 0  ;;  %s679_s12 = smov 0   ;;  %s681_s13 = smov 0  }
   0x4   :  { %s683_s14 = smov 0   ;;  %s685_s15 = smov 0  }
   0x5   :  { %s687_s16 = smov 0   ;;  %s689_s17 = smov 0  }
   0x6 LB: > { %s446_s18 = sadd.s32 4294967295, %s650_s17   ;;  %s447_s19 = sadd.s32 4294967294, %s650_s17   ;;  %s650_s17 = sphi %s689_s17, %s19_s17   ;;  %s646_s16 = sphi %s687_s16, %s880_s16   ;;  %s642_s15 = sphi %s685_s15, %s879_s15   ;;  %s638_s14 = sphi %s683_s14, %s878_s14   ;;  %s634_s13 = sphi %s681_s13, %s877_s13   ;;  %s630_s12 = sphi %s679_s12, %s876_s12  }
   0x7   : > { %s31_s20 = sadd.s32 1, %s646_s16  ;;  %s68_s21 = sadd.s32 1, %s638_s14 }
   0x8   : > { %p33_p0 = scmp.ge.s32.totalorder %s31_s20, 2  ;;  %p75_p1 = scmp.ne.s32.totalorder %s638_s14, %s634_s13 }
   0x9   : > { %p76_p2 = scmp.eq.s32.totalorder %s650_s17, 0  ;;  %p81_p3 = scmp.ne.s32.totalorder %s634_s13, %s630_s12 }
   0xa   : > { %s882_s20 = smov (%p33_p0, %s31_s20), 0  ;;  %p82_p5 = scmp.eq.s32.totalorder %s446_s18, 0 }
   0xb   : > { %p720_p4 = por %p76_p2, %p75_p1  ;;  %s63_s23 = ssub.s32 %s646_s16, %s882_s20 }
   0xc   : > { %p133_p6 = scmp.eq.s32.totalorder %s446_s18, 1  ;;  %p66_p7 = scmp.eq.s32.totalorder %s63_s23, 0 }
   0xd   : > { %p726_p8 = por %p82_p5, %p81_p3  ;;  %p139_p10 = scmp.eq.s32.totalorder %s447_s19, 1 }
   0xe   : > { %p730_p9 = por %p133_p6, %p75_p1  ;;  %p481_p13 = scmp.lt.s32.totalorder %s650_s17, 2 }
   0xf   : > { %s735_s26 = scalar_select %p66_p7, %s638_s14, %s68_s21  }
  0x10   : > { %s869_s25 = scalar_select %p730_p9, 1, 0 }
  0x11   : > { %p737_p11 = por %p139_p10, %p81_p3  ;;  %s172_s28 = sand.u32 1, %s638_s14  }
  0x12   : > { %s450_s29 = sshll.u32 %s172_s28, 4  ;;  %s465_s30 = sshll.u32 %s646_s16, 8 }
  0x13   : > { %s870_s27 = scalar_select %p737_p11, 1, 0 }
  0x14   : > { %s748_s6 = scalar_lea.hbm %s863_s1, %s465_s30  ;;  %s176_s7 = scalar_lea.vmem [#allocation2], %s450_s29 }
  0x15   : > { %s185_s8 = sshll.u32 %s176_s7, 4  ;;  %p754_p0 = pnand %p481_p13, %p720_p4  ;;  %s750_s8 = int_to_ptr.vmem [resolvable:$true] %s185_s8 }
  0x16   : > { %s759_s10 = scalar_lea.sflag [#allocation3], %s172_s28  ;;  %s538_s11 = scalar_lea.hbm %s748_s6, 256 }
  0x17   : > { %p539_p2 = scmp.ne.s32.totalorder %s748_s6, %s538_s11  ;;  %p540_p3 = pneg %p754_p0 }
  0x18   : > { %s543_s21 = scalar_lea.hbm %s863_s1, 512  ;;  %p544_p4 = scmp.lt.u32.totalorder %s748_s6, %s863_s1 }
  0x19   : > { %p541_p5 = pnand %p540_p3, %p539_p2  ;;  %p545_p7 = scmp.lt.u32.totalorder %s543_s21, %s538_s11 }
  0x1a   : > { %p547_p13 = scmp.lt.u32.totalorder %s538_s11, %s748_s6 }
  0x1b   : > { %p542_p6 = pneg %p541_p5  ;;  %p546_p10 = por %p545_p7, %p544_p4 }
  0x1d   : > { %p548_p12 = por %p547_p13, %p546_p10 }
  0x1f   : > { %p549_p1 = pnand %p548_p12, %p542_p6 }
  0x21   : > { %552 = shalt.err (!%p549_p1)
}
  0x22   : > { %s553_s28 = scalar_lea.vmem %s750_s8, 256  ;;  %s652_s29 = smov [#allocation2]  }
  0x23   : > { %p554_p2 = scmp.ne.s32.totalorder %s750_s8, %s553_s28  ;;  %s558_s30 = sshll.u32 %s652_s29, 4  ;;  %s559_s30 = int_to_ptr.vmem [resolvable:$false] %s558_s30 }
  0x24   : > { %s560_s4 = scalar_lea.vmem %s559_s30, 512  ;;  %p561_p9 = scmp.lt.s32.totalorder %s750_s8, %s559_s30 }
  0x25   : > { %p556_p5 = pnand %p554_p2, %p540_p3  ;;  %p562_p4 = scmp.lt.s32.totalorder %s560_s4, %s553_s28 }
  0x27   : > { %p557_p11 = pneg %p556_p5  ;;  %p563_p7 = por %p562_p4, %p561_p9 }
  0x29   : > { %p564_p10 = pnand %p563_p7, %p557_p11 }
  0x2b   : > { %567 = shalt.err (!%p564_p10)
}
  0x2c   : > { %s653_s5 = smov 128   ;;  %s654_s7 = smov 8  }
  0x2d   : > { %476 = dma.hbm_to_vmem [thread:$0]  (!%p754_p0), %s748_s6, 256, %s750_s8, %s759_s10, %s653_s5, %s653_s5, %s654_s7  }
  0x2e   : > { %p206_p12 = scmp.lt.s32.totalorder %s650_s17, 3  ;;  %p872_p1 = scmp.ge.s32.totalorder %s650_s17, 1 }
  0x30   : > { %p207_p3 = pnand %p872_p1, %p206_p12 }
  0x31   : > { %s791_s11 = sand.u32 (!%p207_p3), 1, %s634_s13  }
  0x32   : > { %210 = sbr.rel (%p207_p3) target bundleno = 214 (0xd6), region = 32  ;;  %s454_s18 = sshll.u32 (!%p207_p3), %s791_s11, 4 }
  0x33   : > { %s213_s19 = scalar_lea.sflag (!%p207_p3), [#allocation3], %s791_s11  ;;  %s216_s21 = scalar_lea.vmem (!%p207_p3), [#allocation2], %s454_s18 }
  0x39   : > { %621 = dma.done.wait (%p726_p8), %s213_s19, 256  }
  0x3a   : > { %623 = vsyncadd (%p726_p8), %s213_s19, 4294967040  ;;  %p258_p9 = scmp.lt.s32.totalorder %s642_s15, 1  ;;  %v655_v0 = vmov 0   ;;  %v286_v4 = vld [vmem:[%s216_s21] sm:$0xff]  ;;  %v287_v7 = vld [vmem:[%s216_s21 + $0x8] sm:$0xff]  ;;  %s468_s29 = sshll.u32 %s642_s15, 8 }
  0x3b   : > { %537 = vset.pattern.permute.xlu0 %v655_v0  ;;  %s256_s30 = scalar_lea.vmem [#allocation5], %s454_s18  ;;  %s811_s19 = scalar_lea.hbm %s865_s3, %s468_s29 }
  0x3c   : > { %s259_s6 = scalar_select %p258_p9, %s642_s15, 1 }
  0x3d   : > { %s326_s4 = sshll.u32 %s256_s30, 4  ;;  %s313_s21 = scalar_lea.sflag [#allocation4], %s791_s11  ;;  %s813_s4 = int_to_ptr.vmem [resolvable:$true] %s326_s4 }
  0x3e   : > { %s466_s8 = sshll.u32 %s259_s6, 4  ;;  %s568_s6 = scalar_lea.vmem %s813_s4, 256 }
  0x3f   : > { %s276_s22 = scalar_lea.vmem %s864_s2, %s466_s8  ;;  %s265_s24 = scalar_lea.vmem %s862_s0, %s466_s8 }
  0x40   : > { %v294_v1 = vld [vmem:[%s276_s22] sm:$0xff]  ;;  %v295_v2 = vld [vmem:[%s276_s22 + $0x8] sm:$0xff]  ;;  %p569_p8 = scmp.ne.s32.totalorder %s813_s4, %s568_s6  ;;  %p873_p11 = scmp.ne.s32.totalorder %s869_s25, 0 }
  0x41   : > { %298 = vperm.xlu0 %537, %v294_v1   ;;  %v284_v3 = vld [vmem:[%s265_s24] sm:$0xff]  ;;  %v285_v6 = vld [vmem:[%s265_s24 + $0x8] sm:$0xff]  ;;  %s656_s15 = smov [#allocation5]  }
  0x42   : > { %v288_v5 = vsub.f32 %v284_v3, %v286_v4  ;;  %v289_v9 = vsub.f32 %v285_v6, %v287_v7  ;;  %p570_p0 = pnand %p569_p8, %p873_p11  ;;  %s572_s18 = sshll.u32 %s656_s15, 4  ;;  %s573_s18 = int_to_ptr.vmem [resolvable:$false] %s572_s18 }
  0x43   : > { %s574_s8 = scalar_lea.vmem %s573_s18, 512  ;;  %p575_p13 = scmp.lt.s32.totalorder %s813_s4, %s573_s18 }
  0x44   : > { %v292_v8 = vmul.f32 %v288_v5, %v288_v5  ;;  %v293_v12 = vmul.f32 %v289_v9, %v289_v9  ;;  %p571_p6 = pneg %p570_p0  ;;  %p576_p2 = scmp.lt.s32.totalorder %s574_s8, %s568_s6 }
  0x45   : > { %303 = vperm.xlu0 %537, %v295_v2  }
  0x46   : > { %p577_p5 = por %p576_p2, %p575_p13 }
  0x48   : > { %p578_p4 = pnand %p577_p5, %p571_p6 }
  0xc0   : > { %v299_v10 = vpop.permute.xlu0 %298 }
  0xc1   : > { %v306_v11 = vmul.f32 %v299_v10, %v292_v8 }
  0xc3   : > { %310 = vst [vmem:[%s256_s30] sm:$0xff] %v306_v11 }
  0xc4   : > { %v304_v13 = vpop.permute.xlu0 %303 }
  0xc5   : > { %v307_v14 = vmul.f32 %v304_v13, %v293_v12 }
  0xc7   : > { %311 = vst [vmem:[%s256_s30 + $0x8] sm:$0xff] %v307_v14 }
  0xc8   : > { %581 = shalt.err (!%p578_p4)
}
  0xc9   : > { %s582_s9 = scalar_lea.hbm %s811_s19, 256  ;;  %s586_s23 = scalar_lea.hbm %s865_s3, 512 }
  0xca   : > { %p583_p7 = scmp.ne.s32.totalorder %s811_s19, %s582_s9  ;;  %p587_p1 = scmp.lt.u32.totalorder %s811_s19, %s865_s3 }
  0xcb   : > { %p588_p3 = scmp.lt.u32.totalorder %s586_s23, %s582_s9  ;;  %p590_p8 = scmp.lt.u32.totalorder %s582_s9, %s811_s19 }
  0xcc   : > { %p584_p10 = pnand %p583_p7, %p873_p11 }
  0xcd   : > { %p589_p9 = por %p588_p3, %p587_p1 }
  0xce   : > { %p585_p12 = pneg %p584_p10 }
  0xcf   : > { %p591_p0 = por %p590_p8, %p589_p9 }
  0xd1   : > { %p592_p6 = pnand %p591_p0, %p585_p12 }
  0xd3   : > { %595 = shalt.err (!%p592_p6)
}
  0xd4   : > { %s657_s29 = smov 128   ;;  %s658_s30 = smov 8  }
  0xd5   : > { %471 = dma.vmem_to_hbm [thread:$0]  (%p873_p11), %s813_s4, 256, %s811_s19, %s313_s21, %s657_s29, %s657_s29, %s658_s30  }
  0xd6 PF: > { %s341_s5 = sand.u32 1, %s630_s12   ;;  %p874_p13 = scmp.ne.s32.totalorder %s870_s27, 0 }
  0xd7   : > { %p875_p2 = scmp.ge.s32.totalorder %s650_s17, 2  ;;  %s342_s7 = scalar_lea.sflag [#allocation4], %s341_s5 }
  0xd9   : > { %p478_p5 = pnand %p875_p2, %p874_p13 }
  0xdb   : > { %625 = dma.done.wait (!%p478_p5), %s342_s7, 256  }
  0xdc   : > { %627 = vsyncadd (!%p478_p5), %s342_s7, 4294967040  ;;  %s19_s17 = sadd.s32 1, %s650_s17   ;;  %s876_s12 = smov %s634_s13 }
  0xdd   : > { %p16_p4 = scmp.ge.s32.totalorder %s19_s17, 4   ;;  %s877_s13 = smov %s638_s14 }
  0xde   : > { %s878_s14 = smov %s735_s26  ;;  %s879_s15 = smov %s646_s16 }
  0xdf   : > { %s880_s16 = smov %s882_s20  ;;  %18 = sbr.rel (!%p16_p4) target bundleno = 6 (0x6), region = 87 }
  0xe6   :  { %347 = vsyncpa [#allocation3], 1 }
  0xe7   :  { %349 = vsyncpa [#allocation3 + $0x1], 1 }
  0xe8   :  { %350 = vsyncpa [#allocation4], 1 }
  0xe9   :  { %352 = vsyncpa [#allocation4 + $0x1], 1 }

</bundles_post_ra>
